<compile_context>
chip_gen: v7x
topology: tpu7x:2x2x1
jax: 0.10.0
libtpu: 0.0.40
codegen_flags: <defaults>
</compile_context>

<pallas_src>
import math
import jax
import jax.numpy as jnp
from jax.experimental import pallas as pl
from jax.experimental.pallas import tpu as pltpu


def _round_up(x, m):
    return ((x + m - 1) // m) * m


# ----------------------------- Stage 1: per-edge messages -----------------------------
def message_kernel(lhs_ref, w_ref, msg_ref):
    """Grid = (edge tiles,).  msg = packed_lhs @ packed_weight (single K=128 bf16 matmul)."""
    msg = jnp.dot(lhs_ref[...], w_ref[...], preferred_element_type=jnp.float32)
    msg_ref[...] = msg.astype(msg_ref.dtype)


# ------------------------ Stage 2: mean aggregation + self loop ------------------------
def aggregate_kernel(adj_ref, msg_ref, invdeg_ref, feat_ref, loopw_ref, out_ref, acc_ref):
    """Grid = (node tiles ['parallel'], edge tiles ['arbitrary' / reduction]).

    Per edge tile:   acc += A01_bf16 @ msg_bf16          (sum aggregation on MXU, f32 acc)
    Last edge tile:  out  = acc * inv_deg + feat @ loop_weight   (mean + self-loop, f32)
    """
    e = pl.program_id(1)

    @pl.when(e == 0)
    def _init():
        acc_ref[...] = jnp.zeros_like(acc_ref)

    acc_ref[...] += jnp.dot(adj_ref[...], msg_ref[...],
                            preferred_element_type=jnp.float32)

    @pl.when(e == pl.num_programs(1) - 1)
    def _finalize():
        loop_msg = jnp.dot(feat_ref[...], loopw_ref[...],
                           preferred_element_type=jnp.float32)
        # mean = sum * (1 / in_degree), applied post-matmul in f32 (isolated nodes -> 0).
        # NOTE: F_out=32 => masked (lane-sparse) output stores; output bytes are negligible
        # next to the incidence-matrix traffic, so this is not worth a layout shuffle.
        out_ref[...] = (acc_ref[...] * invdeg_ref[...] + loop_msg).astype(out_ref.dtype)


def rel_graph_conv(feat, rel, src, dst, etype, weight_neighbor, loop_weight,
                   *, tn=512, te=512):
    """Wrapper: gathers / incidence-matrix build are glue; all matmuls live in the kernels."""
    N, F_in = feat.shape
    E = src.shape[0]
    F_out = loop_weight.shape[1]

    tn = min(tn, _round_up(N, 8))          # node-tile (sublane axis of A / output rows)
    te = min(te, _round_up(E, 128))        # edge-tile (lane axis of A / reduction axis)
    n_pad = _round_up(N, tn)
    e_pad = _round_up(E, te)
    k = 3 * F_in
    k_pad = _round_up(k, 128)              # single well-filled contraction for the msg matmul

    # ---- glue: per-edge gathers + folded / packed operands, bf16 at the kernel boundary ----
    h_src = feat[src]                      # (E, F_in) f32
    rel_e = rel[etype]                     # (E, F_in) f32

    # cat([h+r, h*r, h, r]) @ [Wa;Wb;Wc;Wd]  ==  h@(Wa+Wc) + r@(Wa+Wd) + (h*r)@Wb
    wa = weight_neighbor[0 * F_in:1 * F_in]
    wb = weight_neighbor[1 * F_in:2 * F_in]
    wc = weight_neighbor[2 * F_in:3 * F_in]
    wd = weight_neighbor[3 * F_in:4 * F_in]
    w_packed = jnp.concatenate([wa + wc, wa + wd, wb], axis=0)                 # (3*F_in, F_out)
    w_packed = jnp.pad(w_packed, ((0, k_pad - k), (0, 0))).astype(jnp.bfloat16)

    lhs = jnp.concatenate([h_src, rel_e, h_src * rel_e], axis=1).astype(jnp.bfloat16)
    lhs = jnp.pad(lhs, ((0, e_pad - E), (0, k_pad - k)))                       # (E_pad, k_pad)

    # Exact 0/1 incidence matrix (bf16); mean scaling is applied post-matmul in f32.
    # TODO(synk): exploit block sparsity of A (sort edges by dst + scalar-prefetched nonzero-tile
    # table via PrefetchScalarGridSpec) to skip all-zero (tn, te) tiles on large sparse graphs.
    adj = (dst[None, :] == jnp.arange(N)[:, None]).astype(jnp.bfloat16)        # (N, E)
    adj = jnp.pad(adj, ((0, n_pad - N), (0, e_pad - E)))

    in_deg = jnp.zeros((N,), jnp.float32).at[dst].add(1.0)
    inv_deg = jnp.where(in_deg > 0, 1.0 / jnp.maximum(in_deg, 1.0), 0.0)[:, None]
    inv_deg = jnp.pad(inv_deg, ((0, n_pad - N), (0, 0)))                       # (N_pad, 1) f32

    feat_b = jnp.pad(feat, ((0, n_pad - N), (0, 0))).astype(jnp.bfloat16)      # (N_pad, F_in)
    loopw_b = loop_weight.astype(jnp.bfloat16)                                 # (F_in, F_out)

    # ---- Stage 1: per-edge messages, computed exactly once per edge tile ----
    msg = pl.pallas_call(
        message_kernel,
        out_shape=jax.ShapeDtypeStruct((e_pad, F_out), jnp.bfloat16),
        grid_spec=pltpu.PrefetchScalarGridSpec(
            num_scalar_prefetch=0,
            grid=(e_pad // te,),
            in_specs=[
                pl.BlockSpec((te, k_pad), lambda e: (e, 0)),        # packed edge features
                pl.BlockSpec((k_pad, F_out), lambda e: (0, 0)),     # packed/folded weights
            ],
            out_specs=pl.BlockSpec((te, F_out), lambda e: (e, 0)),
        ),
        compiler_params=pltpu.CompilerParams(
            dimension_semantics=("parallel",),
            vmem_limit_bytes=32 * 1024 * 1024,
        ),
    )(lhs, w_packed)

    # ---- Stage 2: mean aggregation (incidence matmul) + fused self-loop ----
    out = pl.pallas_call(
        aggregate_kernel,
        out_shape=jax.ShapeDtypeStruct((n_pad, F_out), jnp.float32),
        grid_spec=pltpu.PrefetchScalarGridSpec(
            num_scalar_prefetch=0,
            grid=(n_pad // tn, e_pad // te),
            in_specs=[
                pl.BlockSpec((tn, te), lambda n, e: (n, e)),        # 0/1 incidence block
                pl.BlockSpec((te, F_out), lambda n, e: (e, 0)),     # per-edge messages (bf16)
                pl.BlockSpec((tn, 1), lambda n, e: (n, 0)),         # 1/in_degree
                pl.BlockSpec((tn, F_in), lambda n, e: (n, 0)),      # node features (self loop)
                pl.BlockSpec((F_in, F_out), lambda n, e: (0, 0)),   # loop weight
            ],
            out_specs=pl.BlockSpec((tn, F_out), lambda n, e: (n, 0)),
            scratch_shapes=[pltpu.VMEM((tn, F_out), jnp.float32)],  # f32 accumulator
        ),
        compiler_params=pltpu.CompilerParams(
            dimension_semantics=("parallel", "arbitrary"),
            vmem_limit_bytes=32 * 1024 * 1024,  # tiles are ~1 MiB; safe on v5e/v6e/v7x
        ),
    )(adj, msg, inv_deg, feat_b, loopw_b)

    return out[:N]


def xavier_uniform(key, shape, gain):
    fan_in, fan_out = shape
    bound = gain * math.sqrt(6.0 / (fan_in + fan_out))
    return jax.random.uniform(key, shape, jnp.float32, -bound, bound)


if __name__ == "__main__":
    # Small synthetic problem consistent with the module: N nodes, E typed edges.
    N, E = 64, 256
    in_feat, out_feat, num_rels = 32, 32, 8

    root = jax.random.PRNGKey(0)
    k_feat, k_rel, k_src, k_dst, k_et, k_wn, k_lw = jax.random.split(root, 7)

    feat = jax.random.normal(k_feat, (N, in_feat), jnp.float32)
    rel = jax.random.normal(k_rel, (num_rels, in_feat), jnp.float32)
    src = jax.random.randint(k_src, (E,), 0, N)
    dst = jax.random.randint(k_dst, (E,), 0, N)
    etype = jax.random.randint(k_et, (E,), 0, num_rels)

    gain = math.sqrt(2.0)  # nn.init.calculate_gain('relu')
    weight_neighbor = xavier_uniform(k_wn, (in_feat * 4, out_feat), gain)
    loop_weight = xavier_uniform(k_lw, (in_feat, out_feat), gain)
    # TODO(synk): h_bias / layer_norm_weight / evolve_loop_weight / weight_neighbor_one / w1
    # are declared in __init__ but never used in forward(), so they are not materialized here.

    # Small tiles on purpose so the (2, 2) grid exercises the accumulator / multi-tile path.
    out = rel_graph_conv(feat, rel, src, dst, etype, weight_neighbor, loop_weight,
                         tn=32, te=128)
    out = jax.block_until_ready(out)
    assert out.shape == (N, out_feat)

    # --- pure-f32 reference (module semantics) ---
    h_src = feat[src]
    rel_e = rel[etype]
    m = jnp.concatenate([h_src + rel_e, h_src * rel_e, h_src, rel_e], axis=1) @ weight_neighbor
    deg = jnp.zeros((N,), jnp.float32).at[dst].add(1.0)
    agg = jnp.zeros((N, out_feat), jnp.float32).at[dst].add(m)
    agg = jnp.where(deg[:, None] > 0, agg / jnp.maximum(deg, 1.0)[:, None], 0.0)
    ref_f32 = agg + feat @ loop_weight

    # --- bf16-consistent reference (matches the kernel's mixed precision exactly) ---
    F = in_feat
    wa, wb, wc, wd = (weight_neighbor[0:F], weight_neighbor[F:2 * F],
                      weight_neighbor[2 * F:3 * F], weight_neighbor[3 * F:4 * F])
    w_b = jnp.concatenate([wa + wc, wa + wd, wb], 0).astype(jnp.bfloat16).astype(jnp.float32)
    lhs_b = jnp.concatenate([h_src, rel_e, h_src * rel_e], 1).astype(jnp.bfloat16).astype(jnp.float32)
    msg_b = (lhs_b @ w_b).astype(jnp.bfloat16).astype(jnp.float32)
    one_hot = (dst[None, :] == jnp.arange(N)[:, None]).astype(jnp.float32)
    inv_deg = jnp.where(deg > 0, 1.0 / jnp.maximum(deg, 1.0), 0.0)[:, None]
    agg_b = (one_hot @ msg_b) * inv_deg
    loop_b = (feat.astype(jnp.bfloat16).astype(jnp.float32)
              @ loop_weight.astype(jnp.bfloat16).astype(jnp.float32))
    ref_b = agg_b + loop_b

    err_b = float(jnp.abs(out - ref_b).max())
    err_f = float(jnp.abs(out - ref_f32).max())
    assert jnp.allclose(out, ref_b, atol=1e-2, rtol=1e-2), err_b     # tight (same precision)
    assert jnp.allclose(out, ref_f32, atol=1e-1, rtol=1e-1), err_f   # sanity vs full-f32 math
    print("KERNEL_OK")
</pallas_src>

<mosaic_0001>
module attributes {stable_mosaic.version = 11 : i64} {
  func.func @message_kernel(%arg0: i32, %arg1: memref<128x128xbf16, #tpu.memory_space<vmem>>, %arg2: memref<128x32xbf16, #tpu.memory_space<vmem>>, %arg3: memref<128x32xbf16, #tpu.memory_space<vmem>>) attributes {dimension_semantics = [#tpu.dimension_semantics<parallel>], iteration_bounds = array<i64: 2>, scalar_prefetch = 0 : i64, scratch_operands = 0 : i64, tpu.core_type = #tpu.core_type<tc>, window_params = [{transform_indices = @transform_0, window_bounds = array<i64: 128, 128>}, {pipeline_mode = #tpu.pipeline_mode<synchronous>, transform_indices = @transform_1, window_bounds = array<i64: 128, 32>}, {transform_indices = @transform_2, window_bounds = array<i64: 128, 32>}]} {
    %c0 = arith.constant 0 : index
    %c0_0 = arith.constant 0 : index
    %0 = vector.load %arg1[%c0, %c0_0] : memref<128x128xbf16, #tpu.memory_space<vmem>>, vector<128x128xbf16>
    %c0_1 = arith.constant 0 : index
    %c0_2 = arith.constant 0 : index
    %1 = vector.load %arg2[%c0_1, %c0_2] : memref<128x32xbf16, #tpu.memory_space<vmem>>, vector<128x32xbf16>
    %cst = arith.constant dense<0.000000e+00> : vector<128x32xf32>
    %2 = tpu.matmul %0, %1, %cst {dimension_numbers = #tpu.dot_dimension_numbers<[1], [0], [0], [1], [0, 0, 1, 1], [], []>} : vector<128x128xbf16>, vector<128x32xbf16>, vector<128x32xf32> -> vector<128x32xf32>
    %3 = arith.truncf %2 : vector<128x32xf32> to vector<128x32xbf16>
    %c0_3 = arith.constant 0 : index
    %c0_4 = arith.constant 0 : index
    %4 = vector.load %arg3[%c0_3, %c0_4] : memref<128x32xbf16, #tpu.memory_space<vmem>>, vector<128x32xbf16>
    tpu.vector_store %arg3[%c0_3, %c0_4], %3 {strides = array<i32>} : memref<128x32xbf16, #tpu.memory_space<vmem>>, vector<128x32xbf16>,
    return
  }
  func.func @transform_0(%arg0: i32) -> (i32, i32) {
    %c0_i32 = arith.constant 0 : i32
    %c0_i32_0 = arith.constant 0 : i32
    return %arg0, %c0_i32 : i32, i32
  }
  func.func @transform_1(%arg0: i32) -> (i32, i32) {
    %c0_i32 = arith.constant 0 : i32
    %c0_i32_0 = arith.constant 0 : i32
    %c0_i32_1 = arith.constant 0 : i32
    return %c0_i32, %c0_i32_0 : i32, i32
  }
  func.func @transform_2(%arg0: i32) -> (i32, i32) {
    %c0_i32 = arith.constant 0 : i32
    %c0_i32_0 = arith.constant 0 : i32
    return %arg0, %c0_i32 : i32, i32
  }
}

</mosaic_0001>

<bundles_post_ra>
// kernel: tpu_custom_call.1
= control target key start
LH: loop header
LB: loop body
LE: loop exit
PB: predicated region body
PF: predicated region fallthrough
CT: control target
= control target key end

     0   :  { %7 = vsyncpa [#allocation3], 0  ;;  %s982_s0 = inlined_call_operand.hbm [shape: bf16[256,128], index: 0, kind: input, shape index: {}]   ;;  %s983_s1 = inlined_call_operand.vmem [shape: bf16[128,32], index: 1, kind: input, shape index: {}]   ;;  %s984_s2 = inlined_call_operand.vmem [shape: bf16[256,32], index: 2, kind: output, shape index: {}]  }
   0x1   :  { %9 = vsyncpa [#allocation3 + $0x1], 0  ;;  %s807_s9 = smov 0   ;;  %s809_s10 = smov 0  }
   0x2   :  { %s811_s11 = smov 0   ;;  %s813_s12 = smov 0  }
   0x3 LB: > { %s540_s13 = sadd.s32 4294967295, %s787_s12   ;;  %s827_s14 = sadd.s32 1, %s787_s12   ;;  %s787_s12 = sphi %s813_s12, %s991_s12   ;;  %s783_s11 = sphi %s811_s11, %s990_s11   ;;  %s779_s10 = sphi %s809_s10, %s989_s10   ;;  %s775_s9 = sphi %s807_s9, %s988_s9  }
   0x4   : > { %s19_s15 = ssub.s32 %s787_s12, %s827_s14  ;;  %s22_s16 = sadd.s32 1, %s783_s11 }
   0x5   : > { %p20_p0 = scmp.eq.s32.totalorder %s19_s15, 0  ;;  %p29_p1 = scmp.ne.s32.totalorder %s783_s11, %s779_s10 }
   0x6   : > { %p30_p2 = scmp.eq.s32.totalorder %s787_s12, 0  ;;  %p35_p3 = scmp.ne.s32.totalorder %s779_s10, %s775_s9 }
   0x7   : > { %s837_s17 = scalar_select %p20_p0, %s783_s11, %s22_s16  }
   0x8   : > { %p31_p4 = por %p30_p2, %p29_p1  ;;  %p36_p5 = scmp.eq.s32.totalorder %s540_s13, 0 }
   0x9   : > { %p672_p6 = scmp.lt.s32.totalorder %s787_s12, 2  ;;  %s109_s19 = sand.u32 1, %s783_s11  }
   0xa   : > { %p842_p7 = por %p36_p5, %p35_p3  ;;  %s544_s20 = sshll.u32 %s109_s19, 6 }
   0xb   : > { %s585_s21 = sshll.u32 %s787_s12, 10  ;;  %s113_s25 = scalar_lea.vmem [#allocation2], %s544_s20 }
   0xc   : > { %s851_s24 = scalar_lea.hbm %s982_s0, %s585_s21  ;;  %s120_s26 = sshll.u32 %s113_s25, 4  ;;  %s853_s26 = int_to_ptr.vmem [resolvable:$true] %s120_s26 }
   0xd   : > { %p855_p8 = pnand %p672_p6, %p31_p4  ;;  %s860_s28 = scalar_lea.sflag [#allocation3], %s109_s19 }
   0xe   : > { %s723_s29 = scalar_lea.hbm %s851_s24, 1024  ;;  %s728_s4 = scalar_lea.hbm %s982_s0, 2048 }
   0xf   : > { %p724_p10 = scmp.ne.s32.totalorder %s851_s24, %s723_s29  ;;  %p725_p11 = pneg %p855_p8 }
  0x10   : > { %p729_p0 = scmp.lt.u32.totalorder %s851_s24, %s982_s0  ;;  %p730_p1 = scmp.lt.u32.totalorder %s728_s4, %s723_s29 }
  0x11   : > { %p726_p12 = pnand %p725_p11, %p724_p10  ;;  %p732_p3 = scmp.lt.u32.totalorder %s723_s29, %s851_s24 }
  0x12   : > { %p731_p2 = por %p730_p1, %p729_p0 }
  0x13   : > { %p727_p13 = pneg %p726_p12 }
  0x14   : > { %p733_p4 = por %p732_p3, %p731_p2 }
  0x16   : > { %p734_p5 = pnand %p733_p4, %p727_p13 }
  0x18   : > { %737 = shalt.err (!%p734_p5)
}
  0x19   : > { %s738_s7 = scalar_lea.vmem %s853_s26, 1024  ;;  %s789_s8 = smov [#allocation2]  }
  0x1a   : > { %p739_p6 = scmp.ne.s32.totalorder %s853_s26, %s738_s7  ;;  %s743_s9 = sshll.u32 %s789_s8, 4  ;;  %s744_s9 = int_to_ptr.vmem [resolvable:$false] %s743_s9 }
  0x1b   : > { %s745_s15 = scalar_lea.vmem %s744_s9, 2048  ;;  %p746_p9 = scmp.lt.s32.totalorder %s853_s26, %s744_s9 }
  0x1c   : > { %p741_p10 = pnand %p739_p6, %p725_p11  ;;  %p747_p0 = scmp.lt.s32.totalorder %s745_s15, %s738_s7 }
  0x1e   : > { %p742_p12 = pneg %p741_p10  ;;  %p748_p1 = por %p747_p0, %p746_p9 }
  0x20   : > { %p749_p2 = pnand %p748_p1, %p742_p12 }
  0x22   : > { %752 = shalt.err (!%p749_p2)
}
  0x23   : > { %s790_s16 = smov 64   ;;  %s791_s19 = smov 4  }
  0x24   : > { %671 = dma.hbm_to_vmem [thread:$0]  (!%p855_p8), %s851_s24, 1024, %s853_s26, %s860_s28, %s790_s16, %s790_s16, %s791_s19  }
  0x25   : > { %p128_p11 = scmp.lt.s32.totalorder %s787_s12, 3  ;;  %p987_p13 = scmp.ge.s32.totalorder %s787_s12, 1 }
  0x27   : > { %p129_p3 = pnand %p987_p13, %p128_p11 }
  0x28   : > { %s134_s20 = sand.u32 (!%p129_p3), 1, %s779_s10  }
  0x29   : > { %132 = sbr.rel (%p129_p3) target bundleno = 308 (0x134), region = 28  ;;  %s548_s21 = sshll.u32 (!%p129_p3), %s134_s20, 6 }
  0x2a   : > { %s135_s22 = scalar_lea.sflag (!%p129_p3), [#allocation3], %s134_s20  ;;  %s892_s23 = scalar_lea.vmem (!%p129_p3), [#allocation2], %s548_s21 }
  0x30   : > { %770 = dma.done.wait (%p842_p7), %s135_s22, 1024  }
  0x31   : > { %772 = vsyncadd (%p842_p7), %s135_s22, 4294966272  ;;  %v707_v0 = vld [vmem:[%s983_s1] sm:$0xff]   ;;  %v708_v1 = vld [vmem:[%s983_s1 + $0x8] sm:$0xff]   ;;  %s549_s16 = sshll.u32 %s540_s13, 4  ;;  %vm456_vm0 = vcmask 257024  }
  0x32   : > { %618 = vmatprep.subr.bf16.mxu0 %v707_v0  ;;  %650 = vmatprep.subr.bf16.mxu1 %v707_v0  ;;  %v709_v2 = vld [vmem:[%s983_s1 + $0x10] sm:$0xff]   ;;  %v710_v3 = vld [vmem:[%s983_s1 + $0x18] sm:$0xff]   ;;  %v715_v4 = vld [vmem:[%s892_s23] sm:$0xff]   ;;  %p161_p7 = scmp.lt.s32.totalorder %s549_s16, 31 }
  0x33   : > { %619 = vmatpush3.bf16.msra.mxu0 %v707_v0  ;;  %658 = vmatpush3.bf16.msra.mxu1 %v707_v0  ;;  %v716_v5 = vld [vmem:[%s892_s23 + $0x20] sm:$0xff]   ;;  %v712_v7 = vld [vmem:[%s983_s1 + $0x28] sm:$0xff]   ;;  %v713_v8 = vld [vmem:[%s983_s1 + $0x30] sm:$0xff]  }
  0x34   : > { %620 = vmatprep.subr.bf16.mxu0 %v708_v1  ;;  %651 = vmatprep.subr.bf16.mxu1 %v708_v1  ;;  %v711_v6 = vld [vmem:[%s983_s1 + $0x20] sm:$0xff]   ;;  %v714_v9 = vld [vmem:[%s983_s1 + $0x38] sm:$0xff]   ;;  %v717_v10 = vld [vmem:[%s892_s23 + $0x8] sm:$0xff]   ;;  %s993_s16 = smov (!%p161_p7, %s549_s16), 31 }
  0x35   : > { %634 = vmatprep.mubr.bf16.mxu0 %v715_v4  ;;  %642 = vmatprep.mubr.bf16.mxu1 %v716_v5  ;;  %v718_v11 = vld [vmem:[%s892_s23 + $0x28] sm:$0xff]   ;;  %v719_v12 = vld [vmem:[%s892_s23 + $0x10] sm:$0xff]   ;;  %v721_v14 = vld [vmem:[%s892_s23 + $0x18] sm:$0xff]   ;;  %s550_s19 = sshll.u32 %s993_s16, 2 }
  0x36   : > { %v720_v13 = vld [vmem:[%s892_s23 + $0x30] sm:$0xff]   ;;  %v722_v15 = vld [vmem:[%s892_s23 + $0x38] sm:$0xff]   ;;  %s935_s22 = scalar_lea.vmem %s984_s2, %s550_s19 }
  0x37   : > { %621 = vmatpush3.bf16.msra.mxu0 %v708_v1  ;;  %659 = vmatpush3.bf16.msra.mxu1 %v708_v1 }
  0x38   : > { %622 = vmatprep.subr.bf16.mxu0 %v709_v2  ;;  %652 = vmatprep.subr.bf16.mxu1 %v709_v2 }
  0x3b   : > { %623 = vmatpush3.bf16.msra.mxu0 %v709_v2  ;;  %660 = vmatpush3.bf16.msra.mxu1 %v709_v2 }
  0x3c   : > { %624 = vmatprep.subr.bf16.mxu0 %v710_v3  ;;  %653 = vmatprep.subr.bf16.mxu1 %v710_v3 }
  0x3f   : > { %625 = vmatpush3.bf16.msra.mxu0 %v710_v3  ;;  %661 = vmatpush3.bf16.msra.mxu1 %v710_v3 }
  0x40   : > { %626 = vmatprep.subr.bf16.mxu0 %v711_v6  ;;  %654 = vmatprep.subr.bf16.mxu1 %v711_v6 }
  0x43   : > { %627 = vmatpush3.bf16.msra.mxu0 %v711_v6  ;;  %662 = vmatpush3.bf16.msra.mxu1 %v711_v6 }
  0x44   : > { %628 = vmatprep.subr.bf16.mxu0 %v712_v7  ;;  %655 = vmatprep.subr.bf16.mxu1 %v712_v7 }
  0x47   : > { %629 = vmatpush3.bf16.msra.mxu0 %v712_v7  ;;  %663 = vmatpush3.bf16.msra.mxu1 %v712_v7 }
  0x48   : > { %630 = vmatprep.subr.bf16.mxu0 %v713_v8  ;;  %656 = vmatprep.subr.bf16.mxu1 %v713_v8 }
  0x4b   : > { %631 = vmatpush3.bf16.msra.mxu0 %v713_v8  ;;  %664 = vmatpush3.bf16.msra.mxu1 %v713_v8 }
  0x4c   : > { %632 = vmatprep.subr.bf16.mxu0 %v714_v9  ;;  %657 = vmatprep.subr.bf16.mxu1 %v714_v9 }
  0x4f   : > { %633 = vmatpush3.bf16.msra.mxu0 %v714_v9  ;;  %665 = vmatpush3.bf16.msra.mxu1 %v714_v9 }
  0x52   : > { %635 = vmatmul.mubr.bf16.vlgmr.msra.gmra.mrb[0].mxu0 %v717_v10  ;;  %643 = vmatmul.mubr.bf16.vlgmr.msra.gmra.mrb[0].mxu1 %v718_v11 }
  0x53   : > { %638 = vmatprep.mubr.bf16.mxu0 %v719_v12  ;;  %646 = vmatprep.mubr.bf16.mxu1 %v720_v13 }
  0x5a   : > { %639 = vmatmul.mubr.bf16.gmra.mrb[4].mxu0 %v721_v14  ;;  %647 = vmatmul.mubr.bf16.gmra.mrb[4].mxu1 %v722_v15 }
 0x125   : > { %v636_v16 = vpop.f32.mrb[0].mxu0  ;;  %v644_v17 = vpop.f32.mrb[0].mxu1 }
 0x126   : > { %v588_v18 = vpack.c.bf16 %v636_v16, %v636_v16  ;;  %v596_v19 = vpack.c.bf16 %v644_v17, %v644_v17  ;;  %v329_v20 = vpop.f32.mrb[1].mxu0  ;;  %v361_v21 = vpop.f32.mrb[1].mxu1 }
 0x127   : > { %v586_v22 = vpack.c.bf16 %v329_v20, %v329_v20  ;;  %v594_v23 = vpack.c.bf16 %v361_v21, %v361_v21  ;;  %v637_v24 = vpop.f32.mrb[2].mxu0  ;;  %v645_v25 = vpop.f32.mrb[2].mxu1 }
 0x128   : > { %459 = vst.msk [vmem:[%s935_s22 + $0x8] sm:$0xf] %vm456_vm0, %v588_v18  ;;  %467 = vst.msk [vmem:[%s935_s22 + $0x28] sm:$0xf] %vm456_vm0, %v596_v19  ;;  %v589_v26 = vpack.c.bf16 %v637_v24, %v637_v24  ;;  %v597_v27 = vpack.c.bf16 %v645_v25, %v645_v25  ;;  %v332_v28 = vpop.f32.mrb[3].mxu0  ;;  %v364_v29 = vpop.f32.mrb[3].mxu1 }
 0x129   : > { %457 = vst.msk [vmem:[%s935_s22] sm:$0xf] %vm456_vm0, %v586_v22  ;;  %465 = vst.msk [vmem:[%s935_s22 + $0x20] sm:$0xf] %vm456_vm0, %v594_v23  ;;  %v587_v30 = vpack.c.bf16 %v332_v28, %v332_v28  ;;  %v595_v31 = vpack.c.bf16 %v364_v29, %v364_v29 }
 0x12a   : > { %460 = vst.msk [vmem:[%s935_s22 + $0xc] sm:$0xf] %vm456_vm0, %v589_v26  ;;  %468 = vst.msk [vmem:[%s935_s22 + $0x2c] sm:$0xf] %vm456_vm0, %v597_v27 }
 0x12b   : > { %458 = vst.msk [vmem:[%s935_s22 + $0x4] sm:$0xf] %vm456_vm0, %v587_v30  ;;  %466 = vst.msk [vmem:[%s935_s22 + $0x24] sm:$0xf] %vm456_vm0, %v595_v31 }
 0x12d   : > { %v640_v32 = vpop.f32.mrb[4].mxu0  ;;  %v648_v33 = vpop.f32.mrb[4].mxu1 }
 0x12e   : > { %v592_v34 = vpack.c.bf16 %v640_v32, %v640_v32  ;;  %v600_v35 = vpack.c.bf16 %v648_v33, %v648_v33  ;;  %v345_v36 = vpop.f32.mrb[5].mxu0  ;;  %v377_v37 = vpop.f32.mrb[5].mxu1 }
 0x12f   : > { %v590_v38 = vpack.c.bf16 %v345_v36, %v345_v36  ;;  %v598_v39 = vpack.c.bf16 %v377_v37, %v377_v37  ;;  %v641_v40 = vpop.f32.mrb[6].mxu0  ;;  %v649_v41 = vpop.f32.mrb[6].mxu1 }
 0x130   : > { %463 = vst.msk [vmem:[%s935_s22 + $0x18] sm:$0xf] %vm456_vm0, %v592_v34  ;;  %471 = vst.msk [vmem:[%s935_s22 + $0x38] sm:$0xf] %vm456_vm0, %v600_v35  ;;  %v593_v42 = vpack.c.bf16 %v641_v40, %v641_v40  ;;  %v601_v43 = vpack.c.bf16 %v649_v41, %v649_v41  ;;  %v348_v44 = vpop.f32.mrb[7].mxu0  ;;  %v380_v45 = vpop.f32.mrb[7].mxu1 }
 0x131   : > { %461 = vst.msk [vmem:[%s935_s22 + $0x10] sm:$0xf] %vm456_vm0, %v590_v38  ;;  %469 = vst.msk [vmem:[%s935_s22 + $0x30] sm:$0xf] %vm456_vm0, %v598_v39  ;;  %v591_v46 = vpack.c.bf16 %v348_v44, %v348_v44  ;;  %v599_v47 = vpack.c.bf16 %v380_v45, %v380_v45 }
 0x132   : > { %464 = vst.msk [vmem:[%s935_s22 + $0x1c] sm:$0xf] %vm456_vm0, %v593_v42  ;;  %472 = vst.msk [vmem:[%s935_s22 + $0x3c] sm:$0xf] %vm456_vm0, %v601_v43 }
 0x133   : > { %462 = vst.msk [vmem:[%s935_s22 + $0x14] sm:$0xf] %vm456_vm0, %v591_v46  ;;  %470 = vst.msk [vmem:[%s935_s22 + $0x34] sm:$0xf] %vm456_vm0, %v599_v47 }
 0x134 PF: > { %p12_p8 = scmp.ge.s32.totalorder %s827_s14, 4   ;;  %s988_s9 = smov %s779_s10 }
 0x135   : > { %s989_s10 = smov %s783_s11  ;;  %s990_s11 = smov %s837_s17 }
 0x136   : > { %s991_s12 = smov %s827_s14  ;;  %14 = sbr.rel (!%p12_p8) target bundleno = 3 (0x3), region = 68 }
 0x13d   :  { %495 = vsyncpa [#allocation3], 1 }
 0x13e   :  { %497 = vsyncpa [#allocation3 + $0x1], 1 }

</bundles_post_ra>
